<compile_context>
chip_gen: v6e
topology: v6e:2x2x1
jax: 0.10.0
libtpu: 0.0.40
codegen_flags: <defaults>
</compile_context>

<pallas_src>
import math
import functools

import jax
import jax.numpy as jnp
from jax.experimental import pallas as pl
from jax.experimental.pallas import tpu as pltpu


# ----------------------------------------------------------------------------
# DDPM schedule (matches torch linear_beta_schedule / cumprod math in __init__)
# ----------------------------------------------------------------------------
def make_schedule(timesteps: int):
    beta_start, beta_end = 1e-4, 2e-2
    betas = jnp.linspace(beta_start, beta_end, timesteps, dtype=jnp.float32)
    alphas = 1.0 - betas
    alphas_cumprod = jnp.cumprod(alphas, axis=0)
    return jnp.sqrt(alphas_cumprod), jnp.sqrt(1.0 - alphas_cumprod)


def _choose_bt(batch: int) -> int:
    """Images packed along lanes per grid step; keep >=2 grid steps (v7x: 2 TCs)."""
    limit = max(1, batch // 2)
    for bt in (32, 16, 8, 4, 2, 1):
        if bt <= limit and batch % bt == 0:
            return bt
    return 1


def make_edge_masks(H: int, W: int, Bt: int):
    """(9, Bt*H*W) f32 {0,1} masks for a 3x3 pad=1 conv done via lane rolls.

    Grid-invariant: computed once on the host and passed as a shared input,
    instead of rebuilding iota/row/col/compare chains every grid step.
    """
    HW = H * W
    lane = jnp.arange(Bt * HW, dtype=jnp.int32)
    p = lane % HW
    row = p // W
    col = p % W
    masks = []
    for dh in (-1, 0, 1):
        for dw in (-1, 0, 1):
            valid = ((row + dh >= 0) & (row + dh < H) &
                     (col + dw >= 0) & (col + dw < W))
            masks.append(valid.astype(jnp.float32))
    return jnp.stack(masks, axis=0)  # (9, Bt*HW)


# ----------------------------------------------------------------------------
# Fused kernel: q_sample -> in-kernel 3x3 im2col (rolls + precomputed masks)
#               -> matmul -> +temb -> SiLU -> matmul -> per-step SSE
# One grid step per Bt-image pack; Bt*HW stays the lane dimension throughout.
# ----------------------------------------------------------------------------
def _ddpm_fused_kernel(coef_ref, x_ref, n_ref, temb_ref, mask_ref,
                       w1_ref, w2_ref, b2_ref, o_ref, *, H, W, Bt):
    HW = H * W
    LHW = Bt * HW

    coef = coef_ref[0]                       # (2, LHW) f32: row0 = sqrt_ac[t], row1 = sqrt_1mac[t]
    x = x_ref[0]                             # (C, LHW) f32
    n = n_ref[0]                             # (C, LHW) f32

    # q_sample: a * x0 + s * noise   (f32 on the VPU; v5e has no bf16 VPU)
    xn = coef[0:1, :] * x + coef[1:2, :] * n

    # im2col for a 3x3 pad=1 conv: 9 lane rolls + precomputed boundary masks.
    # Any roll that wraps into the neighbouring packed image is exactly a
    # masked edge row/col, so zero-padding stays correct for the packed layout.
    m = mask_ref[...]                        # (9, LHW) f32 {0,1}
    taps = []
    k = 0
    for dh in (-1, 0, 1):
        for dw in (-1, 0, 1):
            off = dh * W + dw
            shifted = xn if off == 0 else pltpu.roll(xn, (-off) % LHW, 1)
            taps.append((shifted * m[k:k + 1, :]).astype(jnp.bfloat16))
            k += 1
    # Tap-major ordering: rows [k*C, (k+1)*C) hold tap k. w1 columns match this.
    patches = jnp.concatenate(taps, axis=0)  # (C*9, LHW) bf16

    # conv3x3 as one MXU matmul: (Dh, C*9) @ (C*9, LHW) -> (Dh, LHW), f32 acc.
    h = jnp.dot(w1_ref[...], patches, preferred_element_type=jnp.float32)

    # Per-image time embedding (conv bias b1 already folded in on the host).
    te = temb_ref[0]                         # (Dh, Bt) f32
    Dh = te.shape[0]
    te_full = jnp.concatenate(
        [jnp.broadcast_to(te[:, i:i + 1], (Dh, HW)) for i in range(Bt)], axis=1)
    h = h + te_full
    h = h * jax.nn.sigmoid(h)                # SiLU (EUP), f32

    # conv1x1: (C, Dh) @ (Dh, LHW) -> (C, LHW); predicted noise never hits HBM.
    pred = jnp.dot(w2_ref[...], h.astype(jnp.bfloat16),
                   preferred_element_type=jnp.float32)
    pred = pred + b2_ref[...]                # (C, 1) broadcasts on lanes

    d = n - pred
    sse = jnp.sum(d * d)                     # per-step sum of squared errors
    # Lane-dense (unmasked) store: broadcast scalar across 128 lanes; glue reads lane 0.
    o_ref[...] = jnp.broadcast_to(jnp.reshape(sse, (1, 1, 1)), (1, 1, 128))


def ddpm_fused_pallas(coef, x, n, temb, masks, w1, w2, b2, *, H, W, Bt):
    # coef  : (G, 2, Bt*HW) f32   per-lane q_sample coefficients (a / s)
    # x, n  : (G, C, Bt*HW) f32   x0 / noise, Bt images packed along lanes
    # temb  : (G, Dh, Bt)   f32   time embedding (+ conv bias b1 folded in)
    # masks : (9, Bt*HW)    f32   shared 3x3 boundary masks (grid-invariant)
    # w1    : (Dh, C*9) bf16 ; w2: (C, Dh) bf16 ; b2: (C, 1) f32
    # returns (G, 1, 128) f32; lane 0 of each step holds that step's SSE.
    G, C, LHW = x.shape
    Dh, K = w1.shape
    HW = H * W
    B = G * Bt

    kernel = functools.partial(_ddpm_fused_kernel, H=H, W=W, Bt=Bt)

    flops = 2 * B * HW * Dh * (C * 9 + C)          # conv3x3 + conv1x1
    bytes_accessed = (2 * B * C * HW * 4            # x0 + noise
                      + B * 2 * HW * 4              # coef
                      + B * Dh * 4                  # temb
                      + 9 * LHW * 4                 # masks
                      + (Dh * K + C * Dh) * 2       # weights (bf16)
                      + C * 4                       # b2
                      + G * 128 * 4)                # output
    cost = pl.CostEstimate(flops=int(flops),
                           transcendentals=int(B * Dh * HW),
                           bytes_accessed=int(bytes_accessed))

    return pl.pallas_call(
        kernel,
        out_shape=jax.ShapeDtypeStruct((G, 1, 128), jnp.float32),
        grid=(G,),
        in_specs=[
            pl.BlockSpec((1, 2, LHW), lambda g: (g, 0, 0)),   # coef
            pl.BlockSpec((1, C, LHW), lambda g: (g, 0, 0)),   # x0 pack
            pl.BlockSpec((1, C, LHW), lambda g: (g, 0, 0)),   # noise pack
            pl.BlockSpec((1, Dh, Bt), lambda g: (g, 0, 0)),   # temb (+b1)
            pl.BlockSpec((9, LHW),    lambda g: (0, 0)),      # masks (shared)
            pl.BlockSpec((Dh, K),     lambda g: (0, 0)),      # w1 (bf16, shared)
            pl.BlockSpec((C, Dh),     lambda g: (0, 0)),      # w2 (bf16, shared)
            pl.BlockSpec((C, 1),      lambda g: (0, 0)),      # b2 (shared)
        ],
        out_specs=pl.BlockSpec((1, 1, 128), lambda g: (g, 0, 0)),
        compiler_params=pltpu.CompilerParams(
            dimension_semantics=("parallel",)),
        cost_estimate=cost,
    )(coef, x, n, temb, masks, w1, w2, b2)


# ----------------------------------------------------------------------------
# Glue: sinusoidal time embedding + parameter init
# ----------------------------------------------------------------------------
def sinusoidal_embedding(t, dim):
    half = dim // 2
    denom = max(half - 1, 1)
    freqs = jnp.exp(jnp.arange(half, dtype=jnp.float32)
                    * (-math.log(10000.0) / denom))
    args = t.astype(jnp.float32)[:, None] * freqs[None, :]
    return jnp.concatenate([jnp.sin(args), jnp.cos(args)], axis=-1)


def init_params(key, channels, hidden):
    k = jax.random.split(key, 3)
    scale1 = 1.0 / math.sqrt(channels * 9)
    scale2 = 1.0 / math.sqrt(hidden)
    return dict(
        wt=jax.random.normal(k[0], (hidden, hidden), jnp.float32) * scale2,
        bt=jnp.zeros((hidden,), jnp.float32),
        # w1 columns are tap-major over the 3x3 window (tap k -> cols [k*C,(k+1)*C)).
        w1=jax.random.normal(k[1], (hidden, channels * 9), jnp.float32) * scale1,
        b1=jnp.zeros((hidden,), jnp.float32),
        w2=jax.random.normal(k[2], (channels, hidden), jnp.float32) * scale2,
        b2=jnp.zeros((channels, 1), jnp.float32),
    )


# ----------------------------------------------------------------------------
# Forward: loss = mse(noise, model(q_sample(x0, t, noise), t))
# ----------------------------------------------------------------------------
@functools.partial(jax.jit, static_argnames=("hidden",))
def ddpm_forward(params, sqrt_ac, sqrt_1mac, x0, t, noise, hidden=32):
    B, C, H, W = x0.shape
    HW = H * W
    Bt = _choose_bt(B)
    G = B // Bt
    LHW = Bt * HW

    # schedule gather (== extract()) -- trivial (B,) gathers, then packed into a
    # single per-step lane-broadcast coefficient block (one DMA instead of two).
    a = sqrt_ac[t]                                              # (B,)
    s = sqrt_1mac[t]                                            # (B,)
    coef = jnp.stack([a, s], axis=1)                            # (B, 2)
    coef = coef.reshape(G, Bt, 2).transpose(0, 2, 1)            # (G, 2, Bt)
    coef = jnp.repeat(coef, HW, axis=2)                         # (G, 2, Bt*HW)

    # pack Bt images along the lane axis: (B,C,H,W) -> (G, C, Bt*HW)
    x = x0.reshape(G, Bt, C, HW).transpose(0, 2, 1, 3).reshape(G, C, LHW)
    n = noise.reshape(G, Bt, C, HW).transpose(0, 2, 1, 3).reshape(G, C, LHW)

    # time-embedding MLP (tiny, plain JAX); fold the conv bias b1 in here.
    temb = sinusoidal_embedding(t, hidden)
    temb = jax.nn.silu(temb @ params["wt"] + params["bt"])       # (B, Dh)
    temb = temb + params["b1"][None, :]                          # fold b1
    temb = temb.reshape(G, Bt, hidden).transpose(0, 2, 1)        # (G, Dh, Bt)

    masks = make_edge_masks(H, W, Bt)                            # (9, Bt*HW)

    sse = ddpm_fused_pallas(
        coef, x, n, temb, masks,
        params["w1"].astype(jnp.bfloat16),
        params["w2"].astype(jnp.bfloat16),
        params["b2"],
        H=H, W=W, Bt=Bt,
    )                                                            # (G, 1, 128)

    return jnp.sum(sse[:, 0, 0]) / (B * C * HW)                  # F.mse_loss mean


if __name__ == "__main__":
    B, C, H, W = 2, 4, 16, 16
    T = 100
    HIDDEN = 32

    key = jax.random.PRNGKey(0)
    k_x, k_t, k_n, k_p = jax.random.split(key, 4)

    x0 = jax.random.normal(k_x, (B, C, H, W), jnp.float32)
    t = jax.random.randint(k_t, (B,), 0, T, dtype=jnp.int32)
    noise = jax.random.normal(k_n, (B, C, H, W), jnp.float32)

    sqrt_ac, sqrt_1mac = make_schedule(T)
    params = init_params(k_p, C, HIDDEN)

    loss = ddpm_forward(params, sqrt_ac, sqrt_1mac, x0, t, noise, hidden=HIDDEN)
    jax.block_until_ready(loss)
    assert loss.shape == () and bool(jnp.isfinite(loss))
    print("KERNEL_OK")
</pallas_src>

<mosaic_0001>
module attributes {stable_mosaic.version = 11 : i64} {
  func.func @_ddpm_fused_kernel(%arg0: i32, %arg1: memref<1x2x256xf32, #tpu.memory_space<vmem>>, %arg2: memref<1x4x256xf32, #tpu.memory_space<vmem>>, %arg3: memref<1x4x256xf32, #tpu.memory_space<vmem>>, %arg4: memref<1x32x1xf32, #tpu.memory_space<vmem>>, %arg5: memref<9x256xf32, #tpu.memory_space<vmem>>, %arg6: memref<32x36xbf16, #tpu.memory_space<vmem>>, %arg7: memref<4x32xbf16, #tpu.memory_space<vmem>>, %arg8: memref<4x1xf32, #tpu.memory_space<vmem>>, %arg9: memref<1x1x128xf32, #tpu.memory_space<vmem>>) attributes {dimension_semantics = [#tpu.dimension_semantics<parallel>], iteration_bounds = array<i64: 2>, scalar_prefetch = 0 : i64, scratch_operands = 0 : i64, tpu.core_type = #tpu.core_type<tc>, window_params = [{transform_indices = @transform_0, window_bounds = array<i64: 1, 2, 256>}, {transform_indices = @transform_1, window_bounds = array<i64: 1, 4, 256>}, {transform_indices = @transform_2, window_bounds = array<i64: 1, 4, 256>}, {transform_indices = @transform_3, window_bounds = array<i64: 1, 32, 1>}, {pipeline_mode = #tpu.pipeline_mode<synchronous>, transform_indices = @transform_4, window_bounds = array<i64: 9, 256>}, {pipeline_mode = #tpu.pipeline_mode<synchronous>, transform_indices = @transform_5, window_bounds = array<i64: 32, 36>}, {pipeline_mode = #tpu.pipeline_mode<synchronous>, transform_indices = @transform_6, window_bounds = array<i64: 4, 32>}, {pipeline_mode = #tpu.pipeline_mode<synchronous>, transform_indices = @transform_7, window_bounds = array<i64: 4, 1>}, {transform_indices = @transform_8, window_bounds = array<i64: 1, 1, 128>}]} {
    %c0 = arith.constant 0 : index
    %c0_0 = arith.constant 0 : index
    %c0_1 = arith.constant 0 : index
    %0 = vector.load %arg1[%c0, %c0_0, %c0_1] : memref<1x2x256xf32, #tpu.memory_space<vmem>>, vector<1x2x256xf32>
    %1 = vector.shape_cast %0 : vector<1x2x256xf32> to vector<2x256xf32>
    %c0_2 = arith.constant 0 : index
    %c0_3 = arith.constant 0 : index
    %c0_4 = arith.constant 0 : index
    %2 = vector.load %arg2[%c0_2, %c0_3, %c0_4] : memref<1x4x256xf32, #tpu.memory_space<vmem>>, vector<1x4x256xf32>
    %3 = vector.shape_cast %2 : vector<1x4x256xf32> to vector<4x256xf32>
    %c0_5 = arith.constant 0 : index
    %c0_6 = arith.constant 0 : index
    %c0_7 = arith.constant 0 : index
    %4 = vector.load %arg3[%c0_5, %c0_6, %c0_7] : memref<1x4x256xf32, #tpu.memory_space<vmem>>, vector<1x4x256xf32>
    %5 = vector.shape_cast %4 : vector<1x4x256xf32> to vector<4x256xf32>
    %6 = vector.extract_strided_slice %1 {offsets = [0, 0], sizes = [1, 256], strides = [1, 1]} : vector<2x256xf32> to vector<1x256xf32>
    %7 = vector.broadcast %6 : vector<1x256xf32> to vector<4x256xf32>
    %8 = arith.mulf %7, %3 : vector<4x256xf32>
    %9 = vector.extract_strided_slice %1 {offsets = [1, 0], sizes = [1, 256], strides = [1, 1]} : vector<2x256xf32> to vector<1x256xf32>
    %10 = vector.broadcast %9 : vector<1x256xf32> to vector<4x256xf32>
    %11 = arith.mulf %10, %5 : vector<4x256xf32>
    %12 = arith.addf %8, %11 : vector<4x256xf32>
    %c0_8 = arith.constant 0 : index
    %c0_9 = arith.constant 0 : index
    %13 = vector.load %arg5[%c0_8, %c0_9] : memref<9x256xf32, #tpu.memory_space<vmem>>, vector<9x256xf32>
    %c17_i32 = arith.constant 17 : i32
    %14 = tpu.dynamic_rotate %12 by %c17_i32 dim 1 : vector<4x256xf32>, i32 -> vector<4x256xf32>
    %15 = vector.extract_strided_slice %13 {offsets = [0, 0], sizes = [1, 256], strides = [1, 1]} : vector<9x256xf32> to vector<1x256xf32>
    %16 = vector.broadcast %15 : vector<1x256xf32> to vector<4x256xf32>
    %17 = arith.mulf %14, %16 : vector<4x256xf32>
    %18 = arith.truncf %17 : vector<4x256xf32> to vector<4x256xbf16>
    %c16_i32 = arith.constant 16 : i32
    %19 = tpu.dynamic_rotate %12 by %c16_i32 dim 1 : vector<4x256xf32>, i32 -> vector<4x256xf32>
    %20 = vector.extract_strided_slice %13 {offsets = [1, 0], sizes = [1, 256], strides = [1, 1]} : vector<9x256xf32> to vector<1x256xf32>
    %21 = vector.broadcast %20 : vector<1x256xf32> to vector<4x256xf32>
    %22 = arith.mulf %19, %21 : vector<4x256xf32>
    %23 = arith.truncf %22 : vector<4x256xf32> to vector<4x256xbf16>
    %c15_i32 = arith.constant 15 : i32
    %24 = tpu.dynamic_rotate %12 by %c15_i32 dim 1 : vector<4x256xf32>, i32 -> vector<4x256xf32>
    %25 = vector.extract_strided_slice %13 {offsets = [2, 0], sizes = [1, 256], strides = [1, 1]} : vector<9x256xf32> to vector<1x256xf32>
    %26 = vector.broadcast %25 : vector<1x256xf32> to vector<4x256xf32>
    %27 = arith.mulf %24, %26 : vector<4x256xf32>
    %28 = arith.truncf %27 : vector<4x256xf32> to vector<4x256xbf16>
    %c1_i32 = arith.constant 1 : i32
    %29 = tpu.dynamic_rotate %12 by %c1_i32 dim 1 : vector<4x256xf32>, i32 -> vector<4x256xf32>
    %30 = vector.extract_strided_slice %13 {offsets = [3, 0], sizes = [1, 256], strides = [1, 1]} : vector<9x256xf32> to vector<1x256xf32>
    %31 = vector.broadcast %30 : vector<1x256xf32> to vector<4x256xf32>
    %32 = arith.mulf %29, %31 : vector<4x256xf32>
    %33 = arith.truncf %32 : vector<4x256xf32> to vector<4x256xbf16>
    %34 = vector.extract_strided_slice %13 {offsets = [4, 0], sizes = [1, 256], strides = [1, 1]} : vector<9x256xf32> to vector<1x256xf32>
    %35 = vector.broadcast %34 : vector<1x256xf32> to vector<4x256xf32>
    %36 = arith.mulf %12, %35 : vector<4x256xf32>
    %37 = arith.truncf %36 : vector<4x256xf32> to vector<4x256xbf16>
    %c255_i32 = arith.constant 255 : i32
    %38 = tpu.dynamic_rotate %12 by %c255_i32 dim 1 : vector<4x256xf32>, i32 -> vector<4x256xf32>
    %39 = vector.extract_strided_slice %13 {offsets = [5, 0], sizes = [1, 256], strides = [1, 1]} : vector<9x256xf32> to vector<1x256xf32>
    %40 = vector.broadcast %39 : vector<1x256xf32> to vector<4x256xf32>
    %41 = arith.mulf %38, %40 : vector<4x256xf32>
    %42 = arith.truncf %41 : vector<4x256xf32> to vector<4x256xbf16>
    %c241_i32 = arith.constant 241 : i32
    %43 = tpu.dynamic_rotate %12 by %c241_i32 dim 1 : vector<4x256xf32>, i32 -> vector<4x256xf32>
    %44 = vector.extract_strided_slice %13 {offsets = [6, 0], sizes = [1, 256], strides = [1, 1]} : vector<9x256xf32> to vector<1x256xf32>
    %45 = vector.broadcast %44 : vector<1x256xf32> to vector<4x256xf32>
    %46 = arith.mulf %43, %45 : vector<4x256xf32>
    %47 = arith.truncf %46 : vector<4x256xf32> to vector<4x256xbf16>
    %c240_i32 = arith.constant 240 : i32
    %48 = tpu.dynamic_rotate %12 by %c240_i32 dim 1 : vector<4x256xf32>, i32 -> vector<4x256xf32>
    %49 = vector.extract_strided_slice %13 {offsets = [7, 0], sizes = [1, 256], strides = [1, 1]} : vector<9x256xf32> to vector<1x256xf32>
    %50 = vector.broadcast %49 : vector<1x256xf32> to vector<4x256xf32>
    %51 = arith.mulf %48, %50 : vector<4x256xf32>
    %52 = arith.truncf %51 : vector<4x256xf32> to vector<4x256xbf16>
    %c239_i32 = arith.constant 239 : i32
    %53 = tpu.dynamic_rotate %12 by %c239_i32 dim 1 : vector<4x256xf32>, i32 -> vector<4x256xf32>
    %54 = vector.extract_strided_slice %13 {offsets = [8, 0], sizes = [1, 256], strides = [1, 1]} : vector<9x256xf32> to vector<1x256xf32>
    %55 = vector.broadcast %54 : vector<1x256xf32> to vector<4x256xf32>
    %56 = arith.mulf %53, %55 : vector<4x256xf32>
    %57 = arith.truncf %56 : vector<4x256xf32> to vector<4x256xbf16>
    %58 = tpu.concatenate %18, %23, %28, %33, %37, %42, %47, %52, %57 in 0 : vector<4x256xbf16>, vector<4x256xbf16>, vector<4x256xbf16>, vector<4x256xbf16>, vector<4x256xbf16>, vector<4x256xbf16>, vector<4x256xbf16>, vector<4x256xbf16>, vector<4x256xbf16> -> vector<36x256xbf16>
    %c0_10 = arith.constant 0 : index
    %c0_11 = arith.constant 0 : index
    %59 = vector.load %arg6[%c0_10, %c0_11] : memref<32x36xbf16, #tpu.memory_space<vmem>>, vector<32x36xbf16>
    %cst = arith.constant dense<0.000000e+00> : vector<32x256xf32>
    %60 = tpu.matmul %59, %58, %cst {dimension_numbers = #tpu.dot_dimension_numbers<[1], [0], [0], [1], [0, 0, 1, 1], [], []>} : vector<32x36xbf16>, vector<36x256xbf16>, vector<32x256xf32> -> vector<32x256xf32>
    %c0_12 = arith.constant 0 : index
    %c0_13 = arith.constant 0 : index
    %c0_14 = arith.constant 0 : index
    %61 = vector.load %arg4[%c0_12, %c0_13, %c0_14] : memref<1x32x1xf32, #tpu.memory_space<vmem>>, vector<1x32x1xf32>
    %62 = vector.shape_cast %61 : vector<1x32x1xf32> to vector<32x1xf32>
    %63 = vector.shape_cast %62 : vector<32x1xf32> to vector<32x1xf32>
    %64 = vector.broadcast %63 : vector<32x1xf32> to vector<32x256xf32>
    %65 = arith.addf %60, %64 : vector<32x256xf32>
    %66 = arith.negf %65 : vector<32x256xf32>
    %67 = math.exp %66 : vector<32x256xf32>
    %cst_15 = arith.constant 1.000000e+00 : f32
    %68 = vector.broadcast %cst_15 : f32 to vector<32x256xf32>
    %69 = arith.addf %68, %67 : vector<32x256xf32>
    %70 = arith.divf %68, %69 : vector<32x256xf32>
    %71 = arith.mulf %65, %70 : vector<32x256xf32>
    %c0_16 = arith.constant 0 : index
    %c0_17 = arith.constant 0 : index
    %72 = vector.load %arg7[%c0_16, %c0_17] : memref<4x32xbf16, #tpu.memory_space<vmem>>, vector<4x32xbf16>
    %73 = arith.truncf %71 : vector<32x256xf32> to vector<32x256xbf16>
    %cst_18 = arith.constant dense<0.000000e+00> : vector<4x256xf32>
    %74 = tpu.matmul %72, %73, %cst_18 {dimension_numbers = #tpu.dot_dimension_numbers<[1], [0], [0], [1], [0, 0, 1, 1], [], []>} : vector<4x32xbf16>, vector<32x256xbf16>, vector<4x256xf32> -> vector<4x256xf32>
    %c0_19 = arith.constant 0 : index
    %c0_20 = arith.constant 0 : index
    %75 = vector.load %arg8[%c0_19, %c0_20] : memref<4x1xf32, #tpu.memory_space<vmem>>, vector<4x1xf32>
    %76 = vector.broadcast %75 : vector<4x1xf32> to vector<4x256xf32>
    %77 = arith.addf %74, %76 : vector<4x256xf32>
    %78 = arith.subf %5, %77 : vector<4x256xf32>
    %79 = arith.mulf %78, %78 : vector<4x256xf32>
    %80 = vector.shape_cast %79 : vector<4x256xf32> to vector<1x4x256xf32>
    %cst_21 = arith.constant dense<0.000000e+00> : vector<1xf32>
    %81 = vector.multi_reduction <add>, %80, %cst_21 [1, 2] : vector<1x4x256xf32> to vector<1xf32>
    %82 = vector.shape_cast %81 : vector<1xf32> to vector<1x1x1xf32>
    %83 = vector.extract %82[0, 0, 0] : f32 from vector<1x1x1xf32>
    %84 = vector.broadcast %83 : f32 to vector<1x1x1xf32>
    %85 = vector.shape_cast %84 : vector<1x1x1xf32> to vector<1x1x1xf32>
    %86 = vector.broadcast %85 : vector<1x1x1xf32> to vector<1x1x128xf32>
    %c0_22 = arith.constant 0 : index
    %c0_23 = arith.constant 0 : index
    %c0_24 = arith.constant 0 : index
    %87 = vector.load %arg9[%c0_22, %c0_23, %c0_24] : memref<1x1x128xf32, #tpu.memory_space<vmem>>, vector<1x1x128xf32>
    tpu.vector_store %arg9[%c0_22, %c0_23, %c0_24], %86 {strides = array<i32>} : memref<1x1x128xf32, #tpu.memory_space<vmem>>, vector<1x1x128xf32>,
    return
  }
  func.func @transform_0(%arg0: i32) -> (i32, i32, i32) {
    %c0_i32 = arith.constant 0 : i32
    %c0_i32_0 = arith.constant 0 : i32
    %c0_i32_1 = arith.constant 0 : i32
    return %arg0, %c0_i32, %c0_i32_0 : i32, i32, i32
  }
  func.func @transform_1(%arg0: i32) -> (i32, i32, i32) {
    %c0_i32 = arith.constant 0 : i32
    %c0_i32_0 = arith.constant 0 : i32
    %c0_i32_1 = arith.constant 0 : i32
    return %arg0, %c0_i32, %c0_i32_0 : i32, i32, i32
  }
  func.func @transform_2(%arg0: i32) -> (i32, i32, i32) {
    %c0_i32 = arith.constant 0 : i32
    %c0_i32_0 = arith.constant 0 : i32
    %c0_i32_1 = arith.constant 0 : i32
    return %arg0, %c0_i32, %c0_i32_0 : i32, i32, i32
  }
  func.func @transform_3(%arg0: i32) -> (i32, i32, i32) {
    %c0_i32 = arith.constant 0 : i32
    %c0_i32_0 = arith.constant 0 : i32
    %c0_i32_1 = arith.constant 0 : i32
    return %arg0, %c0_i32, %c0_i32_0 : i32, i32, i32
  }
  func.func @transform_4(%arg0: i32) -> (i32, i32) {
    %c0_i32 = arith.constant 0 : i32
    %c0_i32_0 = arith.constant 0 : i32
    %c0_i32_1 = arith.constant 0 : i32
    return %c0_i32, %c0_i32_0 : i32, i32
  }
  func.func @transform_5(%arg0: i32) -> (i32, i32) {
    %c0_i32 = arith.constant 0 : i32
    %c0_i32_0 = arith.constant 0 : i32
    %c0_i32_1 = arith.constant 0 : i32
    return %c0_i32, %c0_i32_0 : i32, i32
  }
  func.func @transform_6(%arg0: i32) -> (i32, i32) {
    %c0_i32 = arith.constant 0 : i32
    %c0_i32_0 = arith.constant 0 : i32
    %c0_i32_1 = arith.constant 0 : i32
    return %c0_i32, %c0_i32_0 : i32, i32
  }
  func.func @transform_7(%arg0: i32) -> (i32, i32) {
    %c0_i32 = arith.constant 0 : i32
    %c0_i32_0 = arith.constant 0 : i32
    %c0_i32_1 = arith.constant 0 : i32
    return %c0_i32, %c0_i32_0 : i32, i32
  }
  func.func @transform_8(%arg0: i32) -> (i32, i32, i32) {
    %c0_i32 = arith.constant 0 : i32
    %c0_i32_0 = arith.constant 0 : i32
    %c0_i32_1 = arith.constant 0 : i32
    return %arg0, %c0_i32, %c0_i32_0 : i32, i32, i32
  }
}

</mosaic_0001>

<bundles_post_ra>
// kernel: ddpm_forward.1
= control target key start
LH: loop header
LB: loop body
LE: loop exit
PB: predicated region body
PF: predicated region fallthrough
CT: control target
= control target key end

     0   :  { %s1120_s27 = smov 0   ;;  %s1305_s0 = inlined_call_operand.vmem [shape: f32[2,2,256], index: 0, kind: input, shape index: {}]   ;;  %s1306_s1 = inlined_call_operand.vmem [shape: f32[2,4,256], index: 1, kind: input, shape index: {}]   ;;  %s1307_s2 = inlined_call_operand.vmem [shape: f32[2,4,256], index: 2, kind: input, shape index: {}]   ;;  %s1308_s3 = inlined_call_operand.vmem [shape: f32[2,32,1], index: 3, kind: input, shape index: {}]   ;;  %s1309_s4 = inlined_call_operand.vmem [shape: f32[9,256], index: 4, kind: input, shape index: {}]   ;;  %s1310_s5 = inlined_call_operand.vmem [shape: bf16[32,36], index: 5, kind: input, shape index: {}]   ;;  %s1311_s6 = inlined_call_operand.vmem [shape: bf16[4,32], index: 6, kind: input, shape index: {}]   ;;  %s1312_s7 = inlined_call_operand.vmem [shape: f32[4,1], index: 7, kind: input, shape index: {}]   ;;  %s1313_s8 = inlined_call_operand.vmem [shape: f32[2,1,128], index: 8, kind: output, shape index: {}]  }
   0x1 LB: > { %s966_s28 = sadd.s32 4294967295, %s1064_s27   ;;  %p970_p0 = scmp.ge.s32.totalorder %s1064_s27, 1  ;;  %s1064_s27 = sphi %s1120_s27, %s18_s27  }
   0x2   : > { %p292_p1 = scmp.lt.s32.totalorder %s1064_s27, 3 }
   0x4   : > { %p293_p2 = pnand %p970_p0, %p292_p1 }
   0x5   : > { %p339_p3 = scmp.lt.s32.totalorder (!%p293_p2), %s966_s28, 1  ;;  %s1066_s22 = smov (!%p293_p2), 113  }
   0x6   : > { %296 = sbr.rel (%p293_p2) target bundleno = 843 (0x34b), region = 52  ;;  %s1067_s23 = smov (!%p293_p2), 127  }
   0x7   : > { %s1068_s24 = smov (!%p293_p2), 111   ;;  %s1069_s25 = smov (!%p293_p2), 112  }
   0x8   : > { %s1070_s26 = smov (!%p293_p2), 16   ;;  %s1074_s9 = smov (!%p293_p2), 1  }
   0xb   : > { %v367_v0 = vlaneseq  ;;  %s1315_s28 = smov (!%p339_p3, %s966_s28), 1  ;;  %v1172_v20 = vld [vmem:[%s1309_s4] sm:$0xff]  ;;  %v1178_v24 = vld [vmem:[%s1309_s4 + $0x8] sm:$0xff]  ;;  %v1073_v32 = vmov 0   ;;  %vm609_vm4 = vcmask 1041408   ;;  %vm616_vm6 = vcmask 1043456  }
   0xc   : > { %s997_s29 = sshll.u32 %s1315_s28, 2  ;;  %s998_s30 = sshll.u32 %s1315_s28, 3  ;;  %727 = vmatprep.mubr.bf16.mxu0 %v1073_v32  ;;  %1021 = vset.pattern.permute.xlu1 %v1073_v32  ;;  %v809_v37 = vld [vmem:[%s1312_s7] sm:$0xf]  ;;  %vm621_vm8 = vcmask 1045504   ;;  %vm682_vm11 = vcmask 293888  }
   0xd   : > { %v1131_v1 = vshrl.u32 %v367_v0, 7  ;;  %s343_s11 = scalar_lea.vmem %s1305_s0, %s997_s29  ;;  %s348_s14 = scalar_lea.vmem %s1306_s1, %s998_s30  ;;  %1020 = vset.pattern.permute.xlu0 %v1073_v32  ;;  %851 = vmatprep.mubr.bf16.mxu1 %v1073_v32  ;;  %v1198_v38 = vand.u32 127, %v367_v0  ;;  %vm815_vm12 = vcmask 261120  }
   0xe   : > { %s353_s17 = scalar_lea.vmem %s1307_s2, %s998_s30  ;;  %v363_v6 = vld [vmem:[%s343_s11] sm:$0xf]  ;;  %s1071_s29 = smov 15  }
   0xf   : > { %v1136_v2 = vsub.s32 0, %v1131_v1  ;;  %v1139_v3 = vsub.s32 1, %v1131_v1  ;;  %v1142_v4 = vsub.s32 2, %v1131_v1  ;;  %v1145_v5 = vsub.s32 3, %v1131_v1  ;;  %v364_v7 = vld [vmem:[%s348_s14] sm:$0xff]  ;;  %s1072_s30 = smov 17  }
  0x10   : > { %v499_v8 = vsub.s32 4, %v1131_v1  ;;  %v1157_v9 = vld [vmem:[%s353_s17] sm:$0xff]  ;;  %v386_v13 = vcombine.high %v364_v7, %v364_v7  ;;  %s1000_s10 = sshll.u32 %s1315_s28, 5  ;;  %v537_v39 = vsub.s32 6, %v1131_v1  ;;  %v518_v40 = vsub.s32 5, %v1131_v1 }
  0x11   : > { %v370_v10 = vrot.slane %v363_v6, %v1136_v2  ;;  %v393_v11 = vrot.slane %v363_v6, %v1139_v3  ;;  %v374_v12 = vrot.slane %v363_v6, %v1142_v4  ;;  %v397_v14 = vrot.slane %v363_v6, %v1145_v5  ;;  %s358_s13 = scalar_lea.vmem %s1308_s3, %s1000_s10 }
  0x12   : > { %v409_v15 = vcombine.high %v1157_v9, %v1157_v9  ;;  %v500_v25 = vrot.slane %v1172_v20, %v499_v8  ;;  %v504_v27 = vrot.slane %v1178_v24, %v499_v8  ;;  %v651_v33 = vld [vmem:[%s358_s13 + $0x18] sm:$0xff]  ;;  %v650_v34 = vld [vmem:[%s358_s13 + $0x10] sm:$0xff]  ;;  %v648_v35 = vld [vmem:[%s358_s13] sm:$0xff]  ;;  %vm532_vm0 = vcmp.lt.s32.totalorder %v1198_v38, 113 }
  0x13   : > { %v380_v16 = vrot.slane %v370_v10, %v1136_v2  ;;  %v403_v17 = vrot.slane %v393_v11, %v1139_v3  ;;  %v384_v18 = vrot.slane %v374_v12, %v1136_v2  ;;  %v407_v19 = vrot.slane %v397_v14, %v1139_v3  ;;  %v649_v36 = vld [vmem:[%s358_s13 + $0x8] sm:$0xff] }
  0x14   : > { %vm513_vm1 = vcmp.lt.s32.totalorder %v1198_v38, 127  ;;  %v538_v43 = vrot.slane %v1172_v20, %v537_v39  ;;  %v542_v44 = vrot.slane %v1178_v24, %v537_v39  ;;  %v519_v45 = vrot.slane %v1172_v20, %v518_v40 }
  0x15   : > { %v388_v21 = vmul.f32 %v380_v16, %v364_v7  ;;  %v411_v22 = vmul.f32 %v403_v17, %v1157_v9  ;;  %v389_v23 = vmul.f32 %v386_v13, %v384_v18  ;;  %v412_v26 = vmul.f32 %v409_v15, %v407_v19  ;;  %v980_v7 = vld [vmem:[%s1309_s4 + $0x18] ss:$0 sm:$0xff] }
  0x16   : > { %v523_v46 = vrot.slane %v1178_v24, %v518_v40  ;;  %vm570_vm2 = vcmp.lt.s32.totalorder %v1198_v38, 111  ;;  %v556_v49 = vsub.s32 7, %v1131_v1  ;;  %vm551_vm3 = vcmp.lt.s32.totalorder %v1198_v38, 112  ;;  %v979_v1 = vld [vmem:[%s1309_s4 + $0x10] ss:$0 sm:$0xff] }
  0x17   : > { %v413_v28 = vadd.f32 %v411_v22, %v388_v21  ;;  %v414_v29 = vadd.f32 %v412_v26, %v389_v23  ;;  %vm444_vm5 = vcmp.lt.s32.totalorder %v1198_v38, 16  ;;  %v450_v22 = vrot.slane %v1172_v20, %v1139_v3 }
  0x18   : > { %v557_v11 = vrot.slane %v1172_v20, %v556_v49  ;;  %v561_v12 = vrot.slane %v1178_v24, %v556_v49  ;;  %v454_v23 = vrot.slane %v1178_v24, %v1139_v3  ;;  %vm463_vm7 = vcmp.lt.s32.totalorder %v1198_v38, 15 }
  0x19   : > { %528 = vrot.lane.b32.xlu1 %v413_v28, %s1066_s22  ;;  %509 = vrot.lane.b32.xlu0 %v413_v28, %s1067_s23  ;;  %v1182_v30 = vmul.f32 %v500_v25, %v413_v28  ;;  %v1184_v31 = vmul.f32 %v504_v27, %v414_v29  ;;  %vm425_vm9 = vcmp.lt.s32.totalorder %v1198_v38, 17  ;;  %vm482_vm10 = vcmp.lt.s32.totalorder %v1198_v38, 1  ;;  %v1024_v38 = vld [vmem:[%s1310_s5] sm:$0xff]  }
  0x1b   : > { %v508_v58 = vpack.c.bf16 %v1184_v31, %v1184_v31  ;;  %v507_v59 = vpack.c.bf16 %v1182_v30, %v1182_v30 }
  0x1d   : > { %530 = vrot.lane.b32.xlu1 %v414_v29, %s1066_s22  ;;  %511 = vrot.lane.b32.xlu0 %v414_v29, %s1067_s23 }
  0x21   : > { %568 = vrot.lane.b32.xlu1 %v414_v29, %s1068_s24  ;;  %566 = vrot.lane.b32.xlu0 %v413_v28, %s1068_s24 }
  0x25   : > { %549 = vrot.lane.b32.xlu1 %v414_v29, %s1069_s25  ;;  %547 = vrot.lane.b32.xlu0 %v413_v28, %s1069_s25 }
  0x29   : > { %442 = vrot.lane.b32.xlu1 %v414_v29, %s1070_s26  ;;  %440 = vrot.lane.b32.xlu0 %v413_v28, %s1070_s26 }
  0x2d   : > { %461 = vrot.lane.b32.xlu1 %v414_v29, %s1071_s29  ;;  %459 = vrot.lane.b32.xlu0 %v413_v28, %s1071_s29 }
  0x31   : > { %421 = vrot.lane.b32.xlu1 %v414_v29, %s1072_s30  ;;  %419 = vrot.lane.b32.xlu0 %v413_v28, %s1072_s30  ;;  %s361_s30 = scalar_lea.vmem %s1313_s8, %s1315_s28 }
  0x35   : > { %480 = vrot.lane.b32.xlu1 %v414_v29, %s1074_s9  ;;  %478 = vrot.lane.b32.xlu0 %v413_v28, %s1074_s9 }
  0x39   : > { %669 = vperm.xlu1 %1021, %v651_v33   ;;  %664 = vperm.xlu0 %1020, %v650_v34  }
  0x3d   : > { %654 = vperm.xlu1 %1021, %v648_v35   ;;  %659 = vperm.xlu0 %1020, %v649_v36  }
  0x41   : > { %812 = vperm.xlu1 %1021, %v809_v37  }
  0x8b   : > { %v529_v41 = vpop.permute.xlu1 %528  ;;  %v510_v42 = vpop.permute.xlu0 %509 }
  0x8f   : > { %v531_v47 = vpop.permute.xlu1 %530  ;;  %v512_v48 = vpop.permute.xlu0 %511 }
  0x90   : > { %v533_v50 = vsel %vm532_vm0, %v529_v41, %v531_v47  ;;  %v534_v51 = vsel %vm532_vm0, %v531_v47, %v529_v41  ;;  %v514_v52 = vsel %vm513_vm1, %v510_v42, %v512_v48  ;;  %v515_v53 = vsel %vm513_vm1, %v512_v48, %v510_v42 }
  0x91   : > { %v543_v54 = vmul.f32 %v538_v43, %v533_v50  ;;  %v544_v55 = vmul.f32 %v542_v44, %v534_v51  ;;  %v524_v56 = vmul.f32 %v519_v45, %v514_v52  ;;  %v525_v57 = vmul.f32 %v523_v46, %v515_v53 }
  0x92   : > { %v469_v43 = vrot.slane %v1172_v20, %v1142_v4  ;;  %v473_v44 = vrot.slane %v1178_v24, %v1142_v4  ;;  %v431_v4 = vrot.slane %v1172_v20, %v1136_v2 }
  0x93   : > { %v545_v60 = vpack.c.bf16 %v543_v54, %v543_v54  ;;  %v546_v61 = vpack.c.bf16 %v544_v55, %v544_v55  ;;  %v526_v62 = vpack.c.bf16 %v524_v56, %v524_v56  ;;  %v527_v63 = vpack.c.bf16 %v525_v57, %v525_v57  ;;  %v569_v0 = vpop.permute.xlu1 %568  ;;  %v567_v6 = vpop.permute.xlu0 %566 }
  0x94   : > { %v571_v8 = vsel %vm570_vm2, %v567_v6, %v569_v0  ;;  %v572_v10 = vsel %vm570_vm2, %v569_v0, %v567_v6  ;;  %v435_v57 = vrot.slane %v1178_v24, %v1136_v2 }
  0x95   : > { %v603_v13 = vrot.slane %v545_v60, 4  ;;  %v604_v14 = vrot.slane %v546_v61, 4  ;;  %v599_v15 = vrot.slane %v526_v62, 6  ;;  %v600_v16 = vrot.slane %v527_v63, 6 }
  0x96   : > { %v581_v17 = vmul.f32 %v979_v1, %v571_v8  ;;  %v582_v18 = vmul.f32 %v980_v7, %v572_v10  ;;  %v488_v8 = vrot.slane %v1172_v20, %v1145_v5  ;;  %v492_v10 = vrot.slane %v1178_v24, %v1145_v5 }
  0x97   : > { %v550_v19 = vpop.permute.xlu1 %549  ;;  %v548_v21 = vpop.permute.xlu0 %547  ;;  %v633_v25 = vsel %vm609_vm4, %v508_v58, %v600_v16  ;;  %v630_v26 = vsel %vm609_vm4, %v507_v59, %v599_v15 }
  0x98   : > { %v552_v27 = vsel %vm551_vm3, %v548_v21, %v550_v19  ;;  %v553_v28 = vsel %vm551_vm3, %v550_v19, %v548_v21  ;;  %v584_v29 = vpack.c.bf16 %v582_v18, %v582_v18  ;;  %v583_v30 = vpack.c.bf16 %v581_v17, %v581_v17 }
  0x99   : > { %v562_v31 = vmul.f32 %v557_v11, %v552_v27  ;;  %v563_v33 = vmul.f32 %v561_v12, %v553_v28  ;;  %v637_v34 = vsel %vm616_vm6, %v633_v25, %v604_v14  ;;  %v635_v35 = vsel %vm616_vm6, %v630_v26, %v603_v13 }
  0x9a   : > { %983 = vmatprep.subr.msk.bf16.mxu0 %vm609_vm4, %v584_v29  ;;  %v690_v3 = vsel %vm609_vm4, %v583_v30, 0 }
  0x9b   : > { %v564_v36 = vpack.c.bf16 %v562_v31, %v562_v31  ;;  %v565_v37 = vpack.c.bf16 %v563_v33, %v563_v33  ;;  %706 = vmatpush1.bf16.msra.mxu0 %v690_v3  ;;  %v443_v39 = vpop.permute.xlu1 %442  ;;  %v441_v40 = vpop.permute.xlu0 %440  ;;  %v1025_v31 = vld [vmem:[%s1310_s5 + $0x8] sm:$0xff]  }
  0x9c   : > { %v445_v41 = vsel %vm444_vm5, %v441_v40, %v443_v39  ;;  %v446_v42 = vsel %vm444_vm5, %v443_v39, %v441_v40 }
  0x9d   : > { %v607_v45 = vrot.slane %v564_v36, 2  ;;  %v608_v46 = vrot.slane %v565_v37, 2  ;;  %v455_v47 = vmul.f32 %v450_v22, %v446_v42  ;;  %v456_v48 = vmul.f32 %v454_v23, %v445_v41 }
  0x9f   : > { %v462_v49 = vpop.permute.xlu1 %461  ;;  %v460_v50 = vpop.permute.xlu0 %459  ;;  %v642_v51 = vsel %vm621_vm8, %v637_v34, %v608_v46  ;;  %v639_v52 = vsel %vm621_vm8, %v635_v35, %v607_v45  ;;  %v457_v58 = vpack.c.bf16 %v455_v47, %v455_v47  ;;  %v458_v59 = vpack.c.bf16 %v456_v48, %v456_v48 }
  0xa0   : > { %v464_v53 = vsel %vm463_vm7, %v460_v50, %v462_v49  ;;  %v465_v54 = vsel %vm463_vm7, %v462_v49, %v460_v50  ;;  %707 = vmatprep.subr.bf16.mxu0 %v642_v51 }
  0xa1   : > { %v474_v55 = vmul.f32 %v469_v43, %v465_v54  ;;  %v475_v56 = vmul.f32 %v473_v44, %v464_v53  ;;  %708 = vmatpush1.bf16.msra.mxu0 %v639_v52  ;;  %v587_v11 = vrot.slane %v457_v58, 6  ;;  %v588_v2 = vrot.slane %v458_v59, 6 }
  0xa3   : > { %v422_v60 = vpop.permute.xlu1 %421  ;;  %v420_v61 = vpop.permute.xlu0 %419  ;;  %v476_v62 = vpack.c.bf16 %v474_v55, %v474_v55  ;;  %v477_v63 = vpack.c.bf16 %v475_v56, %v475_v56 }
  0xa4   : > { %v426_v0 = vsel %vm425_vm9, %v420_v61, %v422_v60  ;;  %v427_v1 = vsel %vm425_vm9, %v422_v60, %v420_v61 }
  0xa5   : > { %v436_v6 = vmul.f32 %v431_v4, %v427_v1  ;;  %v437_v7 = vmul.f32 %v435_v57, %v426_v0  ;;  %v591_v16 = vrot.slane %v476_v62, 4  ;;  %v592_v17 = vrot.slane %v477_v63, 4 }
  0xa7   : > { %v438_v12 = vpack.c.bf16 %v436_v6, %v436_v6  ;;  %v439_v13 = vpack.c.bf16 %v437_v7, %v437_v7  ;;  %v481_v14 = vpop.permute.xlu1 %480  ;;  %v479_v15 = vpop.permute.xlu0 %478 }
  0xa8   : > { %v483_v18 = vsel %vm482_vm10, %v479_v15, %v481_v14  ;;  %v484_v19 = vsel %vm482_vm10, %v481_v14, %v479_v15 }
  0xa9   : > { %v493_v21 = vmul.f32 %v488_v8, %v484_v19  ;;  %v494_v22 = vmul.f32 %v492_v10, %v483_v18  ;;  %v615_v20 = vsel %vm609_vm4, %v439_v13, %v588_v2  ;;  %v612_v5 = vsel %vm609_vm4, %v438_v12, %v587_v11 }
  0xaa   : > { %v620_v24 = vsel %vm616_vm6, %v615_v20, %v592_v17  ;;  %v618_v23 = vsel %vm616_vm6, %v612_v5, %v591_v16 }
  0xab   : > { %v495_v25 = vpack.c.bf16 %v493_v21, %v493_v21  ;;  %v496_v26 = vpack.c.bf16 %v494_v22, %v494_v22 }
  0xad   : > { %v595_v27 = vrot.slane %v495_v25, 2  ;;  %v596_v28 = vrot.slane %v496_v26, 2 }
  0xaf   : > { %v626_v29 = vsel %vm621_vm8, %v620_v24, %v596_v28  ;;  %v623_v30 = vsel %vm621_vm8, %v618_v23, %v595_v27 }
  0xb0   : > { %709 = vmatprep.subr.bf16.mxu0 %v626_v29 }
  0xb1   : > { %710 = vmatpush1.bf16.msra.mxu0 %v623_v30 }
  0xb4   : > { %984 = vmatmul.mubr.msk.bf16.vlgmr.msra.gmra.mxu0 %vm682_vm11, %v1024_v38  ;;  %v670_v33 = vpop.permute.xlu1 %669  ;;  %v665_v34 = vpop.permute.xlu0 %664 }
  0xb5   : > { %737 = vmatprep.mubr.bf16.mxu0 %v1073_v32 }
  0xb8   : > { %v655_v3 = vpop.permute.xlu1 %654  ;;  %v660_v40 = vpop.permute.xlu0 %659 }
  0xbc   : > { %985 = vmatmul.mubr.msk.bf16.gmra.mxu0 %vm682_vm11, %v1025_v31 }
 0x174   : > { %v729_v35 = vpop.f32.mrf.mxu0 }
 0x175   : > { %v1285_v47 = vadd.f32 %v729_v35, %v655_v3 }
 0x176   : > { %v731_v36 = vpop.f32.mrf.mxu0 }
 0x177   : > { %v1280_v37 = vadd.f32 %v731_v36, %v655_v3  ;;  %v986_v55 = vmul.f32 -1.442695, %v1285_v47  ;;  %v813_v3 = vpop.permute.xlu1 %812 }
 0x178   : > { %v733_v39 = vpop.f32.mrf.mxu0 }
 0x179   : > { %v987_v41 = vmul.f32 -1.442695, %v1280_v37  ;;  %v1283_v44 = vadd.f32 %v733_v39, %v660_v40 }
 0x17a   : > { %v735_v42 = vpop.f32.mrf.mxu0 }
 0x17b   : > { %v736_v43 = vadd.f32 %v735_v42, %v660_v40  ;;  %1026 = vpow2.f32 %v987_v41  ;;  %v988_v51 = vmul.f32 -1.442695, %v1283_v44 }
 0x17c   : > { %v739_v32 = vpop.f32.mrf.mxu0 }
 0x17d   : > { %v989_v45 = vmul.f32 -1.442695, %v736_v43  ;;  %v740_v46 = vadd.f32 %v739_v32, %v665_v34 }
 0x17e   : > { %v741_v48 = vpop.f32.mrf.mxu0 }
 0x17f   : > { %1028 = vpow2.f32 %v989_v45  ;;  %v990_v49 = vmul.f32 -1.442695, %v740_v46  ;;  %v742_v50 = vadd.f32 %v741_v48, %v665_v34  ;;  %v804_v34 = vld [vmem:[%s1311_s6] sm:$0x3] }
 0x180   : > { %v743_v52 = vpop.f32.mrf.mxu0 }
 0x181   : > { %v991_v53 = vmul.f32 -1.442695, %v742_v50  ;;  %v744_v54 = vadd.f32 %v743_v52, %v670_v33  ;;  %1030 = vpow2.f32 %v990_v49 }
 0x182   : > { %v745_v56 = vpop.f32.mrf.mxu0 }
 0x183   : > { %1032 = vpow2.f32 %v991_v53  ;;  %v992_v4 = vmul.f32 -1.442695, %v744_v54  ;;  %v746_v57 = vadd.f32 %v745_v56, %v670_v33 }
 0x184   : > { %1034 = vpow2.f32 %v988_v51 }
 0x185   : > { %1036 = vpow2.f32 %v992_v4  ;;  %v993_v58 = vmul.f32 -1.442695, %v746_v57 }
 0x186   : > { %1038 = vpow2.f32 %v986_v55 }
 0x187   : > { %1040 = vpow2.f32 %v993_v58 }
 0x188   : > { %v1027_v59 = vpop.eup %1026 }
 0x189   : > { %v773_v61 = vadd.f32 1.0, %v1027_v59 }
 0x18b   : > { %1042 = vrcp.f32 %v773_v61 }
 0x18c   : > { %v1029_v60 = vpop.eup %1028 }
 0x18d   : > { %v775_v63 = vadd.f32 1.0, %v1029_v60 }
 0x18e   : > { %v1031_v62 = vpop.eup %1030 }
 0x18f   : > { %v776_v8 = vadd.f32 1.0, %v1031_v62  ;;  %1044 = vrcp.f32 %v775_v63 }
 0x190   : > { %v1033_v0 = vpop.eup %1032 }
 0x191   : > { %v1035_v1 = vpop.eup %1034  ;;  %v777_v6 = vadd.f32 1.0, %v1033_v0 }
 0x192   : > { %v1037_v7 = vpop.eup %1036  ;;  %v774_v12 = vadd.f32 1.0, %v1035_v1 }
 0x193   : > { %v1039_v10 = vpop.eup %1038  ;;  %v778_v11 = vadd.f32 1.0, %v1037_v7  ;;  %1046 = vrcp.f32 %v777_v6 }
 0x194   : > { %v1041_v2 = vpop.eup %1040  ;;  %v772_v14 = vadd.f32 1.0, %v1039_v10 }
 0x195   : > { %1048 = vrcp.f32 %v778_v11  ;;  %v779_v13 = vadd.f32 1.0, %v1041_v2 }
 0x196   : > { %1050 = vrcp.f32 %v776_v8 }
 0x197   : > { %1052 = vrcp.f32 %v779_v13 }
 0x198   : > { %1054 = vrcp.f32 %v774_v12  ;;  %v1043_v15 = vpop.eup %1042 }
 0x199   : > { %1056 = vrcp.f32 %v772_v14  ;;  %v797_v27 = vmul.f32 %v1043_v15, %v1280_v37 }
 0x19c   : > { %v1045_v16 = vpop.eup %1044 }
 0x19d   : > { %v799_v5 = vmul.f32 %v1045_v16, %v736_v43 }
 0x19f   : > { %v806_v38 = vpack.c.bf16 %v799_v5, %v797_v27 }
 0x1a0   : > { %v1047_v17 = vpop.eup %1046 }
 0x1a1   : > { %v801_v24 = vmul.f32 %v1047_v17, %v742_v50 }
 0x1a2   : > { %v1049_v18 = vpop.eup %1048 }
 0x1a3   : > { %v1051_v19 = vpop.eup %1050  ;;  %v802_v22 = vmul.f32 %v1049_v18, %v744_v54 }
 0x1a4   : > { %v1053_v21 = vpop.eup %1052  ;;  %v800_v25 = vmul.f32 %v1051_v19, %v740_v46 }
 0x1a5   : > { %v1055_v20 = vpop.eup %1054  ;;  %v803_v23 = vmul.f32 %v1053_v21, %v746_v57 }
 0x1a6   : > { %v1057_v26 = vpop.eup %1056  ;;  %v798_v29 = vmul.f32 %v1055_v20, %v1283_v44  ;;  %v807_v30 = vpack.c.bf16 %v802_v22, %v800_v25 }
 0x1a7   : > { %v808_v28 = vpack.c.bf16 %v803_v23, %v801_v24  ;;  %v796_v31 = vmul.f32 %v1057_v26, %v1285_v47 }
 0x1a9   : > { %831 = vmatprep.subr.bf16.mxu1 %v808_v28  ;;  %v805_v33 = vpack.c.bf16 %v798_v29, %v796_v31 }
 0x1aa   : > { %832 = vmatpush1.bf16.msra.mxu1 %v807_v30 }
 0x1ab   : > { %833 = vmatprep.subr.bf16.mxu1 %v806_v38 }
 0x1ae   : > { %834 = vmatpush1.bf16.msra.mxu1 %v805_v33 }
 0x1b1   : > { %994 = vmatmul.mubr.msk.bf16.vlgmr.msra.gmra.mxu1 %vm815_vm12, %v804_v34 }
 0x271   : > { %v853_v35 = vpop.f32.mrf.mxu1 }
 0x272   : > { %v854_v37 = vadd.f32 %v853_v35, %v813_v3 }
 0x273   : > { %v855_v36 = vpop.f32.mrf.mxu1 }
 0x274   : > { %v856_v39 = vadd.f32 %v855_v36, %v813_v3 }
 0x275   : > { %v857_v40 = vpop.f32.mrf.mxu1 }
 0x276   : > { %v862_v41 = vcombine.low %v854_v37, %v856_v39 }
 0x277   : > { %v858_v42 = vpop.f32.mrf.mxu1 }
 0x278   : > { %v864_v43 = vsub.f32 %v1157_v9, %v862_v41 }
 0x27a   : > { %v865_v44 = vmul.f32 %v864_v43, %v864_v43 }
 0x27c   : > { %v867_v32 = vcombine.high %v865_v44, %v865_v44  ;;  %v869_v45 = vsel %vm616_vm6, %v865_v44, 0.0 }
 0x27e   : > { %v870_v46 = vsel %vm616_vm6, %v867_v32, 0.0 }
 0x27f   : > { %v871_v47 = vadd.f32 %v870_v46, %v869_v45 }
 0x281   : > { %872 = vadd.xlane.f32.xlu0 %v871_v47 }
 0x30a   : > { %v873_v48 = vpop.xlane.xlu0 %872 }
 0x30b   : > { %v874_v49 = vrot.slane %v873_v48, 4 }
 0x30d   : > { %v875_v50 = vadd.f32 %v874_v49, %v873_v48 }
 0x30f   : > { %v876_v51 = vrot.slane %v875_v50, 2 }
 0x311   : > { %v877_v52 = vadd.f32 %v876_v51, %v875_v50 }
 0x313   : > { %v878_v53 = vrot.slane %v877_v52, 1 }
 0x315   : > { %v879_v54 = vadd.f32 %v878_v53, %v877_v52 }
 0x317   : > { %1001 = vpush %v879_v54 }
 0x348   : > { %s1002_s9 = spop %1001 }
 0x349   : > { %v881_v9 = vstv %s1002_s9 }
 0x34a   : > { %882 = vst [vmem:[%s361_s30] sm:$0x1] %v881_v9 }
 0x34b PF: > { %s18_s27 = sadd.s32 1, %s1064_s27  }
 0x34c   : > { %p15_p4 = scmp.ge.s32.totalorder %s18_s27, 4  }
 0x34e   :  { %17 = sbr.rel (!%p15_p4) target bundleno = 1 (0x1), region = 91 }

</bundles_post_ra>
